<compile_context>
chip_gen: v7x
topology: tpu7x:2x2x1
jax: 0.10.0
libtpu: 0.0.40
codegen_flags: <defaults>
</compile_context>

<pallas_src>
import functools
import math

import jax
import jax.numpy as jnp
from jax import lax
from jax.experimental import pallas as pl
from jax.experimental.pallas import tpu as pltpu


# ----------------------------------------------------------------------------
# In-kernel math helpers (traced arrays, transposed (C, M) layout).
# ----------------------------------------------------------------------------
def _mm(a, b):
    """W @ x style MXU matmul: bf16 inputs, f32 accumulation."""
    return jnp.dot(a.astype(jnp.bfloat16), b.astype(jnp.bfloat16),
                   preferred_element_type=jnp.float32)


_TRANS_B = (((1,), (1,)), ((), ()))


def _mm_tb(a, b):
    """a @ b^T (contract the lane dims of both) on the MXU, bf16 in / f32 acc."""
    return lax.dot_general(a.astype(jnp.bfloat16), b.astype(jnp.bfloat16),
                           dimension_numbers=_TRANS_B,
                           preferred_element_type=jnp.float32)


def _elu1(x):
    # elu(x) + 1; exp() argument clamped to <= 0 so there is no transient inf.
    return jnp.where(x > 0, x + 1.0, jnp.exp(jnp.minimum(x, 0.0)))


def _layernorm_t(x, g, b):
    """LayerNorm over the channel (sublane) axis of a (C, M) array; g, b are (C, 1)."""
    mu = jnp.mean(x, axis=0, keepdims=True)
    var = jnp.mean(jnp.square(x - mu), axis=0, keepdims=True)
    return (x - mu) * lax.rsqrt(var + 1e-5) * g + b


def _linear_attn_msg_t(qf_t, kf_t, v_t, s_len):
    """LoFTR LinearAttention (nhead=1), transposed layout.
    qf_t (C, M); kf_t, v_t (C, S) -> message^T (C, M)."""
    inv_s = 1.0 / float(s_len)
    kv_t = _mm_tb(v_t * inv_s, kf_t)                            # (C_v, C_d)
    ksum = jnp.sum(kf_t, axis=1, keepdims=True)                 # (C, 1)
    den = jnp.sum(qf_t * ksum, axis=0, keepdims=True) + 1e-6    # (1, M)
    z = pl.reciprocal(den, approx=False) * float(s_len)         # exact per feedback
    return _mm(kv_t, qf_t) * z                                  # (C, M)


def _merge_mlp_residual_t(x_t, msg_t, wm, w1, w2, g1, b1, g2, b2):
    merged = _mm(wm, msg_t)                            # (C, M)
    n1 = _layernorm_t(merged, g1, b1)
    cat = jnp.concatenate([x_t, n1], axis=0)           # (2C, M): sublane concat (free)
    h = jnp.maximum(_mm(w1, cat), 0.0)                 # single K=2C matmul
    n2 = _layernorm_t(_mm(w2, h), g2, b2)              # (C, M)
    return x_t + n2


# ----------------------------------------------------------------------------
# Kernel 1: standalone AttentionLayer (the spec module).
# ----------------------------------------------------------------------------
def _attention_layer_kernel(x_ref, src_ref, wqkv_ref, wm_ref, w1_ref, w2_ref,
                            g1_ref, b1_ref, g2_ref, b2_ref, out_ref, *, s_len):
    C = x_ref.shape[1]
    x_t = x_ref[0]                          # (C, TL) f32
    s_t = src_ref[0]                        # (C, S)  f32
    wqkv = wqkv_ref[...]                    # (3C, C) bf16
    qf = _elu1(_mm(wqkv[:C], x_t))          # (C, TL)
    kvp = _mm(wqkv[C:], s_t)                # (2C, S) fused K/V projection
    kf, v = _elu1(kvp[:C]), kvp[C:]
    msg = _linear_attn_msg_t(qf, kf, v, s_len)
    out_ref[0] = _merge_mlp_residual_t(
        x_t, msg, wm_ref[...], w1_ref[...], w2_ref[...],
        g1_ref[...], b1_ref[...], g2_ref[...], b2_ref[...])


def _pick_q_tile(length, cap=1024):
    """Largest multiple-of-128 divisor of `length` that is <= cap, else full length."""
    if length <= cap:
        return length
    for t in range(cap - cap % 128, 0, -128):
        if length % t == 0:
            return t
    return length


@jax.jit
def attention_layer(x, source, prep):
    """AttentionLayer.forward with masks=None. x: (B, L, C), source: (B, S, C) -> (B, L, C)."""
    B, L, C = x.shape
    _, S, _ = source.shape
    # One-time relayout to the lane-dense transposed layout used inside the kernel.
    x_t = jnp.transpose(x, (0, 2, 1))        # (B, C, L)
    s_t = jnp.transpose(source, (0, 2, 1))   # (B, C, S)
    tl = _pick_q_tile(L)
    c2, c3 = 2 * C, 3 * C
    w_map = lambda b, t: (0, 0)
    grid_spec = pltpu.PrefetchScalarGridSpec(
        num_scalar_prefetch=0,
        grid=(B, L // tl),
        in_specs=[
            pl.BlockSpec((1, C, tl), lambda b, t: (b, 0, t)),   # x^T (query tile)
            pl.BlockSpec((1, C, S), lambda b, t: (b, 0, 0)),    # source^T (reused)
            pl.BlockSpec((c3, C), w_map),                       # [Wq;Wk;Wv]
            pl.BlockSpec((C, C), w_map),                        # Wmerge
            pl.BlockSpec((c2, c2), w_map),                      # Wmlp1
            pl.BlockSpec((C, c2), w_map),                       # Wmlp2
            pl.BlockSpec((C, 1), w_map),                        # gamma1
            pl.BlockSpec((C, 1), w_map),                        # beta1
            pl.BlockSpec((C, 1), w_map),                        # gamma2
            pl.BlockSpec((C, 1), w_map),                        # beta2
        ],
        out_specs=pl.BlockSpec((1, C, tl), lambda b, t: (b, 0, t)),
    )
    out_t = pl.pallas_call(
        functools.partial(_attention_layer_kernel, s_len=S),
        out_shape=jax.ShapeDtypeStruct((B, C, L), jnp.float32),
        grid_spec=grid_spec,
        compiler_params=pltpu.CompilerParams(
            dimension_semantics=("parallel", "parallel")),
    )(x_t, s_t, prep["wqkv"], prep["wm"], prep["w1"], prep["w2"],
      prep["g1"], prep["b1"], prep["g2"], prep["b2"])
    return jnp.transpose(out_t, (0, 2, 1))


# ----------------------------------------------------------------------------
# Kernel 2: fused FeatureMatchingTransformer forward (['self','cross']*k over V views).
#   One grid step = one batch element; views carried as separate traced values.
# ----------------------------------------------------------------------------
def _fmt_fused_kernel(x_ref, wqkv_ref, wm_ref, w1_ref, w2_ref,
                      g1_ref, b1_ref, g2_ref, b2_ref, out_ref,
                      *, num_views, layer_names):
    C = x_ref.shape[2]
    L = x_ref.shape[3]
    views = [x_ref[0, vi] for vi in range(num_views)]           # each (C, L) f32

    for layer_idx, name in enumerate(layer_names):
        wqkv, wm = wqkv_ref[layer_idx], wm_ref[layer_idx]
        w1, w2 = w1_ref[layer_idx], w2_ref[layer_idx]
        g1, b1 = g1_ref[layer_idx], b1_ref[layer_idx]
        g2, b2 = g2_ref[layer_idx], b2_ref[layer_idx]

        if name == "self":
            new_views = []
            for f in views:
                qkv = _mm(wqkv, f)                              # fused QKV: (3C, L)
                qk = _elu1(qkv[:2 * C])
                msg = _linear_attn_msg_t(qk[:C], qk[C:], qkv[2 * C:], L)
                new_views.append(
                    _merge_mlp_residual_t(f, msg, wm, w1, w2, g1, b1, g2, b2))
            views = new_views
        else:   # cross: views 1..V-1 query view 0; view 0 passes through untouched.
            f0 = views[0]
            kvp = _mm(wqkv[C:], f0)                             # shared K/V: (2C, L)
            kf, v = _elu1(kvp[:C]), kvp[C:]
            kv_t = _mm_tb(v * (1.0 / float(L)), kf)             # (C, C), shared
            ksum = jnp.sum(kf, axis=1, keepdims=True)           # (C, 1), shared
            new_views = [f0]
            for f in views[1:]:
                qf = _elu1(_mm(wqkv[:C], f))                    # (C, L)
                den = jnp.sum(qf * ksum, axis=0, keepdims=True) + 1e-6
                msg = _mm(kv_t, qf) * (pl.reciprocal(den, approx=False) * float(L))
                new_views.append(
                    _merge_mlp_residual_t(f, msg, wm, w1, w2, g1, b1, g2, b2))
            views = new_views

    for vi in range(num_views):
        out_ref[0, vi] = views[vi]


@functools.partial(jax.jit, static_argnames=("B", "V"))
def fmt_forward(feats, B, V, prep):
    """feats: (B*V, C, H, W), grouped as feats.reshape(B, V, C, H, W) (view 0 of each
    group is the reference view). Output has the same, positionally aligned layout."""
    N, C, H, W = feats.shape
    assert N == B * V and V >= 2
    L = H * W
    x = feats.reshape(B, V, C, L)          # pure reshape -> already lane-dense layout
    NL = prep["wqkv"].shape[0]
    assert NL % 2 == 0
    layer_names = ("self", "cross") * (NL // 2)
    c2, c3 = 2 * C, 3 * C
    w3 = lambda b: (0, 0, 0)
    grid_spec = pltpu.PrefetchScalarGridSpec(
        num_scalar_prefetch=0,
        grid=(B,),
        in_specs=[
            pl.BlockSpec((1, V, C, L), lambda b: (b, 0, 0, 0)),  # activations
            pl.BlockSpec((NL, c3, C), w3),                       # [Wq;Wk;Wv] per layer
            pl.BlockSpec((NL, C, C), w3),                        # Wmerge
            pl.BlockSpec((NL, c2, c2), w3),                      # Wmlp1
            pl.BlockSpec((NL, C, c2), w3),                       # Wmlp2
            pl.BlockSpec((NL, C, 1), w3),                        # gamma1
            pl.BlockSpec((NL, C, 1), w3),                        # beta1
            pl.BlockSpec((NL, C, 1), w3),                        # gamma2
            pl.BlockSpec((NL, C, 1), w3),                        # beta2
        ],
        out_specs=pl.BlockSpec((1, V, C, L), lambda b: (b, 0, 0, 0)),
    )
    out = pl.pallas_call(
        functools.partial(_fmt_fused_kernel, num_views=V, layer_names=layer_names),
        out_shape=jax.ShapeDtypeStruct((B, V, C, L), jnp.float32),
        grid_spec=grid_spec,
        compiler_params=pltpu.CompilerParams(dimension_semantics=("parallel",)),
    )(x, prep["wqkv"], prep["wm"], prep["w1"], prep["w2"],
      prep["g1"], prep["b1"], prep["g2"], prep["b2"])
    return out.reshape(B * V, C, H, W)


# ----------------------------------------------------------------------------
# Parameter init (torch layout) + one-time kernel-ready preparation.
# ----------------------------------------------------------------------------
def _xavier_uniform(key, out_dim, in_dim):
    bound = math.sqrt(6.0 / (in_dim + out_dim))
    return jax.random.uniform(key, (out_dim, in_dim), jnp.float32, -bound, bound)


def init_attention_layer_params(key, d_model):
    ks = jax.random.split(key, 6)
    return dict(
        wq=_xavier_uniform(ks[0], d_model, d_model),
        wk=_xavier_uniform(ks[1], d_model, d_model),
        wv=_xavier_uniform(ks[2], d_model, d_model),
        wm=_xavier_uniform(ks[3], d_model, d_model),
        w1=_xavier_uniform(ks[4], 2 * d_model, 2 * d_model),
        w2=_xavier_uniform(ks[5], d_model, 2 * d_model),
        g1=jnp.ones((d_model,), jnp.float32), b1=jnp.zeros((d_model,), jnp.float32),
        g2=jnp.ones((d_model,), jnp.float32), b2=jnp.zeros((d_model,), jnp.float32),
    )


def prepare_attention_layer_params(p):
    """One-time prep: fuse QKV, cast matmul weights to bf16, reshape LN params to (C,1)."""
    C = p["wq"].shape[0]
    bf16 = lambda a: a.astype(jnp.bfloat16)
    col = lambda a: a.reshape(C, 1).astype(jnp.float32)
    return dict(
        wqkv=bf16(jnp.concatenate([p["wq"], p["wk"], p["wv"]], axis=0)),   # (3C, C)
        wm=bf16(p["wm"]), w1=bf16(p["w1"]), w2=bf16(p["w2"]),
        g1=col(p["g1"]), b1=col(p["b1"]), g2=col(p["g2"]), b2=col(p["b2"]),
    )


def prepare_fmt_params(param_list):
    preps = [prepare_attention_layer_params(p) for p in param_list]
    return {k: jnp.stack([pp[k] for pp in preps]) for k in preps[0]}


# ----------------------------------------------------------------------------
# Pure-JAX f32 references (numerical checks; match the torch module exactly).
# ----------------------------------------------------------------------------
def _ln_ref(t, g, b):
    mu = t.mean(-1, keepdims=True)
    var = ((t - mu) ** 2).mean(-1, keepdims=True)
    return (t - mu) / jnp.sqrt(var + 1e-5) * g + b


def _attention_layer_ref(x, source, p):
    S = source.shape[1]
    q = x @ p["wq"].T
    k = source @ p["wk"].T
    v = source @ p["wv"].T
    qf = jnp.where(q > 0, q + 1.0, jnp.exp(jnp.minimum(q, 0.0)))
    kf = jnp.where(k > 0, k + 1.0, jnp.exp(jnp.minimum(k, 0.0)))
    kv = jnp.einsum("bsd,bsv->bdv", kf, v / S)
    z = 1.0 / (jnp.einsum("bld,bd->bl", qf, kf.sum(1)) + 1e-6)
    msg = jnp.einsum("bld,bdv->blv", qf, kv) * z[..., None] * S
    n1 = _ln_ref(msg @ p["wm"].T, p["g1"], p["b1"])
    h = jnp.maximum(jnp.concatenate([x, n1], axis=-1) @ p["w1"].T, 0.0)
    n2 = _ln_ref(h @ p["w2"].T, p["g2"], p["b2"])
    return x + n2


def _fmt_forward_ref(feats, B, V, params):
    N, C, H, W = feats.shape
    L = H * W
    f = feats.reshape(B, V, C, L)
    views = [jnp.transpose(f[:, vi], (0, 2, 1)) for vi in range(V)]    # (B, L, C) each
    for p, name in zip(params, ("self", "cross") * (len(params) // 2)):
        if name == "self":
            views = [_attention_layer_ref(vw, vw, p) for vw in views]
        else:
            views = [views[0]] + [_attention_layer_ref(views[i], views[0], p)
                                  for i in range(1, V)]
    out = jnp.stack([jnp.transpose(vw, (0, 2, 1)) for vw in views], axis=1)
    return out.reshape(B * V, C, H, W)


if __name__ == "__main__":
    key = jax.random.PRNGKey(0)
    B, V = 2, 2
    C, H, W = 32, 8, 16            # d_model=32 (module default); L = H*W = 128 (lane-dense)
    L, S = H * W, 64
    k_feats, k_x, k_src, k_params = jax.random.split(key, 4)

    params = [init_attention_layer_params(k, C) for k in jax.random.split(k_params, 4)]
    prep0 = prepare_attention_layer_params(params[0])   # one-time weight prep
    prep_fmt = prepare_fmt_params(params)

    # 1) Standalone AttentionLayer (the spec module), x != source, S != L.
    x = jax.random.normal(k_x, (B, L, C), dtype=jnp.float32)
    src = jax.random.normal(k_src, (B, S, C), dtype=jnp.float32)
    y = jax.block_until_ready(attention_layer(x, src, prep0))
    y_ref = _attention_layer_ref(x, src, params[0])
    rel1 = float(jnp.linalg.norm(y - y_ref) / jnp.linalg.norm(y_ref))
    assert y.shape == (B, L, C) and bool(jnp.all(jnp.isfinite(y)))
    assert rel1 < 5e-2, f"attention_layer mismatch: rel={rel1}"

    # 2) Fused FeatureMatchingTransformer forward (one pallas_call).
    feats = jax.random.normal(k_feats, (B * V, C, H, W), dtype=jnp.float32)
    out = jax.block_until_ready(fmt_forward(feats, B, V, prep_fmt))
    out_ref = _fmt_forward_ref(feats, B, V, params)
    rel2 = float(jnp.linalg.norm(out - out_ref) / jnp.linalg.norm(out_ref))
    assert out.shape == (B * V, C, H, W) and bool(jnp.all(jnp.isfinite(out)))
    assert rel2 < 5e-2, f"fmt_forward mismatch: rel={rel2}"

    print("KERNEL_OK")
</pallas_src>

<mosaic_0001>
module attributes {stable_mosaic.version = 11 : i64} {
  func.func @_attention_layer_kernel(%arg0: i32, %arg1: i32, %arg2: memref<1x32x128xf32, #tpu.memory_space<vmem>>, %arg3: memref<1x32x64xf32, #tpu.memory_space<vmem>>, %arg4: memref<96x32xbf16, #tpu.memory_space<vmem>>, %arg5: memref<32x32xbf16, #tpu.memory_space<vmem>>, %arg6: memref<64x64xbf16, #tpu.memory_space<vmem>>, %arg7: memref<32x64xbf16, #tpu.memory_space<vmem>>, %arg8: memref<32x1xf32, #tpu.memory_space<vmem>>, %arg9: memref<32x1xf32, #tpu.memory_space<vmem>>, %arg10: memref<32x1xf32, #tpu.memory_space<vmem>>, %arg11: memref<32x1xf32, #tpu.memory_space<vmem>>, %arg12: memref<1x32x128xf32, #tpu.memory_space<vmem>>) attributes {dimension_semantics = [#tpu.dimension_semantics<parallel>, #tpu.dimension_semantics<parallel>], iteration_bounds = array<i64: 2, 1>, scalar_prefetch = 0 : i64, scratch_operands = 0 : i64, tpu.core_type = #tpu.core_type<tc>, window_params = [{transform_indices = @transform_0, window_bounds = array<i64: 1, 32, 128>}, {transform_indices = @transform_1, window_bounds = array<i64: 1, 32, 64>}, {pipeline_mode = #tpu.pipeline_mode<synchronous>, transform_indices = @transform_2, window_bounds = array<i64: 96, 32>}, {pipeline_mode = #tpu.pipeline_mode<synchronous>, transform_indices = @transform_3, window_bounds = array<i64: 32, 32>}, {pipeline_mode = #tpu.pipeline_mode<synchronous>, transform_indices = @transform_4, window_bounds = array<i64: 64, 64>}, {pipeline_mode = #tpu.pipeline_mode<synchronous>, transform_indices = @transform_5, window_bounds = array<i64: 32, 64>}, {pipeline_mode = #tpu.pipeline_mode<synchronous>, transform_indices = @transform_6, window_bounds = array<i64: 32, 1>}, {pipeline_mode = #tpu.pipeline_mode<synchronous>, transform_indices = @transform_7, window_bounds = array<i64: 32, 1>}, {pipeline_mode = #tpu.pipeline_mode<synchronous>, transform_indices = @transform_8, window_bounds = array<i64: 32, 1>}, {pipeline_mode = #tpu.pipeline_mode<synchronous>, transform_indices = @transform_9, window_bounds = array<i64: 32, 1>}, {transform_indices = @transform_10, window_bounds = array<i64: 1, 32, 128>}]} {
    %c0 = arith.constant 0 : index
    %c0_0 = arith.constant 0 : index
    %c0_1 = arith.constant 0 : index
    %0 = vector.load %arg2[%c0, %c0_0, %c0_1] : memref<1x32x128xf32, #tpu.memory_space<vmem>>, vector<1x32x128xf32>
    %1 = vector.shape_cast %0 : vector<1x32x128xf32> to vector<32x128xf32>
    %c0_2 = arith.constant 0 : index
    %c0_3 = arith.constant 0 : index
    %c0_4 = arith.constant 0 : index
    %2 = vector.load %arg3[%c0_2, %c0_3, %c0_4] : memref<1x32x64xf32, #tpu.memory_space<vmem>>, vector<1x32x64xf32>
    %3 = vector.shape_cast %2 : vector<1x32x64xf32> to vector<32x64xf32>
    %c0_5 = arith.constant 0 : index
    %c0_6 = arith.constant 0 : index
    %4 = vector.load %arg4[%c0_5, %c0_6] : memref<96x32xbf16, #tpu.memory_space<vmem>>, vector<96x32xbf16>
    %5 = vector.extract_strided_slice %4 {offsets = [0, 0], sizes = [32, 32], strides = [1, 1]} : vector<96x32xbf16> to vector<32x32xbf16>
    %6 = arith.truncf %1 : vector<32x128xf32> to vector<32x128xbf16>
    %cst = arith.constant dense<0.000000e+00> : vector<32x128xf32>
    %7 = tpu.matmul %5, %6, %cst {dimension_numbers = #tpu.dot_dimension_numbers<[1], [0], [0], [1], [0, 0, 1, 1], [], []>} : vector<32x32xbf16>, vector<32x128xbf16>, vector<32x128xf32> -> vector<32x128xf32>
    %cst_7 = arith.constant 0.000000e+00 : f32
    %8 = vector.broadcast %cst_7 : f32 to vector<32x128xf32>
    %9 = arith.cmpf ogt, %7, %8 : vector<32x128xf32>
    %cst_8 = arith.constant 1.000000e+00 : f32
    %10 = vector.broadcast %cst_8 : f32 to vector<32x128xf32>
    %11 = arith.addf %7, %10 : vector<32x128xf32>
    %cst_9 = arith.constant 0.000000e+00 : f32
    %12 = vector.broadcast %cst_9 : f32 to vector<32x128xf32>
    %13 = arith.minimumf %7, %12 : vector<32x128xf32>
    %14 = math.exp %13 : vector<32x128xf32>
    %15 = arith.select %9, %11, %14 : vector<32x128xi1>, vector<32x128xf32>
    %16 = vector.extract_strided_slice %4 {offsets = [32, 0], sizes = [64, 32], strides = [1, 1]} : vector<96x32xbf16> to vector<64x32xbf16>
    %17 = arith.truncf %3 : vector<32x64xf32> to vector<32x64xbf16>
    %cst_10 = arith.constant dense<0.000000e+00> : vector<64x64xf32>
    %18 = tpu.matmul %16, %17, %cst_10 {dimension_numbers = #tpu.dot_dimension_numbers<[1], [0], [0], [1], [0, 0, 1, 1], [], []>} : vector<64x32xbf16>, vector<32x64xbf16>, vector<64x64xf32> -> vector<64x64xf32>
    %19 = vector.extract_strided_slice %18 {offsets = [0, 0], sizes = [32, 64], strides = [1, 1]} : vector<64x64xf32> to vector<32x64xf32>
    %cst_11 = arith.constant 0.000000e+00 : f32
    %20 = vector.broadcast %cst_11 : f32 to vector<32x64xf32>
    %21 = arith.cmpf ogt, %19, %20 : vector<32x64xf32>
    %cst_12 = arith.constant 1.000000e+00 : f32
    %22 = vector.broadcast %cst_12 : f32 to vector<32x64xf32>
    %23 = arith.addf %19, %22 : vector<32x64xf32>
    %cst_13 = arith.constant 0.000000e+00 : f32
    %24 = vector.broadcast %cst_13 : f32 to vector<32x64xf32>
    %25 = arith.minimumf %19, %24 : vector<32x64xf32>
    %26 = math.exp %25 : vector<32x64xf32>
    %27 = arith.select %21, %23, %26 : vector<32x64xi1>, vector<32x64xf32>
    %28 = vector.extract_strided_slice %18 {offsets = [32, 0], sizes = [32, 64], strides = [1, 1]} : vector<64x64xf32> to vector<32x64xf32>
    %cst_14 = arith.constant 1.562500e-02 : f32
    %29 = vector.broadcast %cst_14 : f32 to vector<32x64xf32>
    %30 = arith.mulf %28, %29 : vector<32x64xf32>
    %31 = arith.truncf %30 : vector<32x64xf32> to vector<32x64xbf16>
    %32 = arith.truncf %27 : vector<32x64xf32> to vector<32x64xbf16>
    %cst_15 = arith.constant dense<0.000000e+00> : vector<32x32xf32>
    %33 = tpu.matmul %31, %32, %cst_15 {dimension_numbers = #tpu.dot_dimension_numbers<[1], [1], [0], [0], [0, 0, 1, 0], [], []>} : vector<32x64xbf16>, vector<32x64xbf16>, vector<32x32xf32> -> vector<32x32xf32>
    %cst_16 = arith.constant dense<0.000000e+00> : vector<32xf32>
    %34 = vector.multi_reduction <add>, %27, %cst_16 [1] : vector<32x64xf32> to vector<32xf32>
    %35 = vector.shape_cast %34 : vector<32xf32> to vector<32x1xf32>
    %36 = vector.broadcast %35 : vector<32x1xf32> to vector<32x128xf32>
    %37 = arith.mulf %15, %36 : vector<32x128xf32>
    %cst_17 = arith.constant dense<0.000000e+00> : vector<128xf32>
    %38 = vector.multi_reduction <add>, %37, %cst_17 [0] : vector<32x128xf32> to vector<128xf32>
    %39 = vector.shape_cast %38 : vector<128xf32> to vector<1x128xf32>
    %cst_18 = arith.constant 9.99999997E-7 : f32
    %40 = vector.broadcast %cst_18 : f32 to vector<1x128xf32>
    %41 = arith.addf %39, %40 : vector<1x128xf32>
    %42 = tpu.reciprocal %41 : vector<1x128xf32> -> vector<1x128xf32>
    %cst_19 = arith.constant 6.400000e+01 : f32
    %43 = vector.broadcast %cst_19 : f32 to vector<1x128xf32>
    %44 = arith.mulf %42, %43 : vector<1x128xf32>
    %45 = arith.truncf %33 : vector<32x32xf32> to vector<32x32xbf16>
    %46 = arith.truncf %15 : vector<32x128xf32> to vector<32x128xbf16>
    %cst_20 = arith.constant dense<0.000000e+00> : vector<32x128xf32>
    %47 = tpu.matmul %45, %46, %cst_20 {dimension_numbers = #tpu.dot_dimension_numbers<[1], [0], [0], [1], [0, 0, 1, 1], [], []>} : vector<32x32xbf16>, vector<32x128xbf16>, vector<32x128xf32> -> vector<32x128xf32>
    %48 = vector.broadcast %44 : vector<1x128xf32> to vector<32x128xf32>
    %49 = arith.mulf %47, %48 : vector<32x128xf32>
    %c0_21 = arith.constant 0 : index
    %c0_22 = arith.constant 0 : index
    %50 = vector.load %arg5[%c0_21, %c0_22] : memref<32x32xbf16, #tpu.memory_space<vmem>>, vector<32x32xbf16>
    %c0_23 = arith.constant 0 : index
    %c0_24 = arith.constant 0 : index
    %51 = vector.load %arg6[%c0_23, %c0_24] : memref<64x64xbf16, #tpu.memory_space<vmem>>, vector<64x64xbf16>
    %c0_25 = arith.constant 0 : index
    %c0_26 = arith.constant 0 : index
    %52 = vector.load %arg7[%c0_25, %c0_26] : memref<32x64xbf16, #tpu.memory_space<vmem>>, vector<32x64xbf16>
    %c0_27 = arith.constant 0 : index
    %c0_28 = arith.constant 0 : index
    %53 = vector.load %arg8[%c0_27, %c0_28] : memref<32x1xf32, #tpu.memory_space<vmem>>, vector<32x1xf32>
    %c0_29 = arith.constant 0 : index
    %c0_30 = arith.constant 0 : index
    %54 = vector.load %arg9[%c0_29, %c0_30] : memref<32x1xf32, #tpu.memory_space<vmem>>, vector<32x1xf32>
    %c0_31 = arith.constant 0 : index
    %c0_32 = arith.constant 0 : index
    %55 = vector.load %arg10[%c0_31, %c0_32] : memref<32x1xf32, #tpu.memory_space<vmem>>, vector<32x1xf32>
    %c0_33 = arith.constant 0 : index
    %c0_34 = arith.constant 0 : index
    %56 = vector.load %arg11[%c0_33, %c0_34] : memref<32x1xf32, #tpu.memory_space<vmem>>, vector<32x1xf32>
    %57 = arith.truncf %49 : vector<32x128xf32> to vector<32x128xbf16>
    %cst_35 = arith.constant dense<0.000000e+00> : vector<32x128xf32>
    %58 = tpu.matmul %50, %57, %cst_35 {dimension_numbers = #tpu.dot_dimension_numbers<[1], [0], [0], [1], [0, 0, 1, 1], [], []>} : vector<32x32xbf16>, vector<32x128xbf16>, vector<32x128xf32> -> vector<32x128xf32>
    %cst_36 = arith.constant dense<0.000000e+00> : vector<128xf32>
    %59 = vector.multi_reduction <add>, %58, %cst_36 [0] : vector<32x128xf32> to vector<128xf32>
    %60 = vector.shape_cast %59 : vector<128xf32> to vector<1x128xf32>
    %cst_37 = arith.constant 3.200000e+01 : f32
    %61 = vector.broadcast %cst_37 : f32 to vector<1x128xf32>
    %62 = arith.divf %60, %61 : vector<1x128xf32>
    %63 = vector.broadcast %62 : vector<1x128xf32> to vector<32x128xf32>
    %64 = arith.subf %58, %63 : vector<32x128xf32>
    %65 = arith.mulf %64, %64 : vector<32x128xf32>
    %cst_38 = arith.constant dense<0.000000e+00> : vector<128xf32>
    %66 = vector.multi_reduction <add>, %65, %cst_38 [0] : vector<32x128xf32> to vector<128xf32>
    %67 = vector.shape_cast %66 : vector<128xf32> to vector<1x128xf32>
    %cst_39 = arith.constant 3.200000e+01 : f32
    %68 = vector.broadcast %cst_39 : f32 to vector<1x128xf32>
    %69 = arith.divf %67, %68 : vector<1x128xf32>
    %70 = vector.broadcast %62 : vector<1x128xf32> to vector<32x128xf32>
    %71 = arith.subf %58, %70 : vector<32x128xf32>
    %cst_40 = arith.constant 9.99999974E-6 : f32
    %72 = vector.broadcast %cst_40 : f32 to vector<1x128xf32>
    %73 = arith.addf %69, %72 : vector<1x128xf32>
    %74 = math.rsqrt %73 : vector<1x128xf32>
    %75 = vector.broadcast %74 : vector<1x128xf32> to vector<32x128xf32>
    %76 = arith.mulf %71, %75 : vector<32x128xf32>
    %77 = vector.broadcast %53 : vector<32x1xf32> to vector<32x128xf32>
    %78 = arith.mulf %76, %77 : vector<32x128xf32>
    %79 = vector.broadcast %54 : vector<32x1xf32> to vector<32x128xf32>
    %80 = arith.addf %78, %79 : vector<32x128xf32>
    %81 = tpu.concatenate %1, %80 in 0 : vector<32x128xf32>, vector<32x128xf32> -> vector<64x128xf32>
    %82 = arith.truncf %81 : vector<64x128xf32> to vector<64x128xbf16>
    %cst_41 = arith.constant dense<0.000000e+00> : vector<64x128xf32>
    %83 = tpu.matmul %51, %82, %cst_41 {dimension_numbers = #tpu.dot_dimension_numbers<[1], [0], [0], [1], [0, 0, 1, 1], [], []>} : vector<64x64xbf16>, vector<64x128xbf16>, vector<64x128xf32> -> vector<64x128xf32>
    %cst_42 = arith.constant 0.000000e+00 : f32
    %84 = vector.broadcast %cst_42 : f32 to vector<64x128xf32>
    %85 = arith.maximumf %83, %84 : vector<64x128xf32>
    %86 = arith.truncf %85 : vector<64x128xf32> to vector<64x128xbf16>
    %cst_43 = arith.constant dense<0.000000e+00> : vector<32x128xf32>
    %87 = tpu.matmul %52, %86, %cst_43 {dimension_numbers = #tpu.dot_dimension_numbers<[1], [0], [0], [1], [0, 0, 1, 1], [], []>} : vector<32x64xbf16>, vector<64x128xbf16>, vector<32x128xf32> -> vector<32x128xf32>
    %cst_44 = arith.constant dense<0.000000e+00> : vector<128xf32>
    %88 = vector.multi_reduction <add>, %87, %cst_44 [0] : vector<32x128xf32> to vector<128xf32>
    %89 = vector.shape_cast %88 : vector<128xf32> to vector<1x128xf32>
    %cst_45 = arith.constant 3.200000e+01 : f32
    %90 = vector.broadcast %cst_45 : f32 to vector<1x128xf32>
    %91 = arith.divf %89, %90 : vector<1x128xf32>
    %92 = vector.broadcast %91 : vector<1x128xf32> to vector<32x128xf32>
    %93 = arith.subf %87, %92 : vector<32x128xf32>
    %94 = arith.mulf %93, %93 : vector<32x128xf32>
    %cst_46 = arith.constant dense<0.000000e+00> : vector<128xf32>
    %95 = vector.multi_reduction <add>, %94, %cst_46 [0] : vector<32x128xf32> to vector<128xf32>
    %96 = vector.shape_cast %95 : vector<128xf32> to vector<1x128xf32>
    %cst_47 = arith.constant 3.200000e+01 : f32
    %97 = vector.broadcast %cst_47 : f32 to vector<1x128xf32>
    %98 = arith.divf %96, %97 : vector<1x128xf32>
    %99 = vector.broadcast %91 : vector<1x128xf32> to vector<32x128xf32>
    %100 = arith.subf %87, %99 : vector<32x128xf32>
    %cst_48 = arith.constant 9.99999974E-6 : f32
    %101 = vector.broadcast %cst_48 : f32 to vector<1x128xf32>
    %102 = arith.addf %98, %101 : vector<1x128xf32>
    %103 = math.rsqrt %102 : vector<1x128xf32>
    %104 = vector.broadcast %103 : vector<1x128xf32> to vector<32x128xf32>
    %105 = arith.mulf %100, %104 : vector<32x128xf32>
    %106 = vector.broadcast %55 : vector<32x1xf32> to vector<32x128xf32>
    %107 = arith.mulf %105, %106 : vector<32x128xf32>
    %108 = vector.broadcast %56 : vector<32x1xf32> to vector<32x128xf32>
    %109 = arith.addf %107, %108 : vector<32x128xf32>
    %110 = arith.addf %1, %109 : vector<32x128xf32>
    %c0_49 = arith.constant 0 : index
    %c0_50 = arith.constant 0 : index
    %c0_51 = arith.constant 0 : index
    %111 = vector.load %arg12[%c0_49, %c0_50, %c0_51] : memref<1x32x128xf32, #tpu.memory_space<vmem>>, vector<1x32x128xf32>
    %112 = vector.shape_cast %111 : vector<1x32x128xf32> to vector<32x128xf32>
    %113 = vector.shape_cast %110 : vector<32x128xf32> to vector<1x32x128xf32>
    tpu.vector_store %arg12[%c0_49, %c0_50, %c0_51], %113 {strides = array<i32>} : memref<1x32x128xf32, #tpu.memory_space<vmem>>, vector<1x32x128xf32>,
    return
  }
  func.func @transform_0(%arg0: i32, %arg1: i32) -> (i32, i32, i32) {
    %c0_i32 = arith.constant 0 : i32
    %c0_i32_0 = arith.constant 0 : i32
    return %arg0, %c0_i32, %arg1 : i32, i32, i32
  }
  func.func @transform_1(%arg0: i32, %arg1: i32) -> (i32, i32, i32) {
    %c0_i32 = arith.constant 0 : i32
    %c0_i32_0 = arith.constant 0 : i32
    %c0_i32_1 = arith.constant 0 : i32
    return %arg0, %c0_i32, %c0_i32_0 : i32, i32, i32
  }
  func.func @transform_2(%arg0: i32, %arg1: i32) -> (i32, i32) {
    %c0_i32 = arith.constant 0 : i32
    %c0_i32_0 = arith.constant 0 : i32
    %c0_i32_1 = arith.constant 0 : i32
    return %c0_i32, %c0_i32_0 : i32, i32
  }
  func.func @transform_3(%arg0: i32, %arg1: i32) -> (i32, i32) {
    %c0_i32 = arith.constant 0 : i32
    %c0_i32_0 = arith.constant 0 : i32
    %c0_i32_1 = arith.constant 0 : i32
    return %c0_i32, %c0_i32_0 : i32, i32
  }
  func.func @transform_4(%arg0: i32, %arg1: i32) -> (i32, i32) {
    %c0_i32 = arith.constant 0 : i32
    %c0_i32_0 = arith.constant 0 : i32
    %c0_i32_1 = arith.constant 0 : i32
    return %c0_i32, %c0_i32_0 : i32, i32
  }
  func.func @transform_5(%arg0: i32, %arg1: i32) -> (i32, i32) {
    %c0_i32 = arith.constant 0 : i32
    %c0_i32_0 = arith.constant 0 : i32
    %c0_i32_1 = arith.constant 0 : i32
    return %c0_i32, %c0_i32_0 : i32, i32
  }
  func.func @transform_6(%arg0: i32, %arg1: i32) -> (i32, i32) {
    %c0_i32 = arith.constant 0 : i32
    %c0_i32_0 = arith.constant 0 : i32
    %c0_i32_1 = arith.constant 0 : i32
    return %c0_i32, %c0_i32_0 : i32, i32
  }
  func.func @transform_7(%arg0: i32, %arg1: i32) -> (i32, i32) {
    %c0_i32 = arith.constant 0 : i32
    %c0_i32_0 = arith.constant 0 : i32
    %c0_i32_1 = arith.constant 0 : i32
    return %c0_i32, %c0_i32_0 : i32, i32
  }
  func.func @transform_8(%arg0: i32, %arg1: i32) -> (i32, i32) {
    %c0_i32 = arith.constant 0 : i32
    %c0_i32_0 = arith.constant 0 : i32
    %c0_i32_1 = arith.constant 0 : i32
    return %c0_i32, %c0_i32_0 : i32, i32
  }
  func.func @transform_9(%arg0: i32, %arg1: i32) -> (i32, i32) {
    %c0_i32 = arith.constant 0 : i32
    %c0_i32_0 = arith.constant 0 : i32
    %c0_i32_1 = arith.constant 0 : i32
    return %c0_i32, %c0_i32_0 : i32, i32
  }
  func.func @transform_10(%arg0: i32, %arg1: i32) -> (i32, i32, i32) {
    %c0_i32 = arith.constant 0 : i32
    %c0_i32_0 = arith.constant 0 : i32
    return %arg0, %c0_i32, %arg1 : i32, i32, i32
  }
}

</mosaic_0001>

<bundles_post_ra>
// kernel: attention_layer.1
= control target key start
LH: loop header
LB: loop body
LE: loop exit
PB: predicated region body
PF: predicated region fallthrough
CT: control target
= control target key end

     0   :  { %15 = vsyncpa [#allocation3], 0  ;;  %s2042_s0 = inlined_call_operand.vmem [shape: f32[2,32,128], index: 0, kind: input, shape index: {}]   ;;  %s2043_s1 = inlined_call_operand.vmem [shape: f32[2,32,64], index: 1, kind: input, shape index: {}]   ;;  %s2044_s2 = inlined_call_operand.vmem [shape: bf16[96,32], index: 2, kind: input, shape index: {}]   ;;  %s2045_s3 = inlined_call_operand.vmem [shape: bf16[32,32], index: 3, kind: input, shape index: {}]   ;;  %s2046_s4 = inlined_call_operand.vmem [shape: bf16[64,64], index: 4, kind: input, shape index: {}]   ;;  %s2047_s5 = inlined_call_operand.vmem [shape: bf16[32,64], index: 5, kind: input, shape index: {}]   ;;  %s2048_s6 = inlined_call_operand.vmem [shape: f32[32,1], index: 6, kind: input, shape index: {}]   ;;  %s2049_s7 = inlined_call_operand.vmem [shape: f32[32,1], index: 7, kind: input, shape index: {}]   ;;  %s2050_s8 = inlined_call_operand.vmem [shape: f32[32,1], index: 8, kind: input, shape index: {}]   ;;  %s2051_s9 = inlined_call_operand.vmem [shape: f32[32,1], index: 9, kind: input, shape index: {}]   ;;  %s2052_s10 = inlined_call_operand.hbm [shape: f32[2,32,128], index: 10, kind: output, shape index: {}]  }
   0x1   :  { %17 = vsyncpa [#allocation3 + $0x1], 0  ;;  %s1748_s13 = smov 0   ;;  %s1750_s14 = smov 0  }
   0x2   :  { %s1752_s15 = smov 0   ;;  %s1754_s16 = smov 0  }
   0x3   :  { %s1756_s17 = smov 0   ;;  %s1758_s18 = smov 0  }
   0x4 LB: > { %2055 = sst [smem:[#allocation5_spill]] %s1683_s17  ;;  %s1353_s19 = sadd.s32 4294967295, %s1687_s18   ;;  %s1687_s18 = sphi %s1758_s18, %s23_s18   ;;  %s1683_s17 = sphi %s1756_s17, %s2060_s17   ;;  %s1679_s16 = sphi %s1754_s16, %s2059_s16   ;;  %s1675_s15 = sphi %s1752_s15, %s2063_s15   ;;  %s1671_s14 = sphi %s1750_s14, %s2062_s14   ;;  %s1667_s13 = sphi %s1748_s13, %s2061_s13  }
   0x5   : > { %s1354_s20 = sadd.s32 4294967294, %s1687_s18   ;;  %s35_s21 = sadd.s32 1, %s1683_s17 }
   0x6   : > { %s266_s22 = sadd.s32 1, %s1675_s15  ;;  %p37_p0 = scmp.ge.s32.totalorder %s35_s21, 2 }
   0x7   : > { %p276_p1 = scmp.ne.s32.totalorder %s1675_s15, %s1671_s14  ;;  %p277_p2 = scmp.eq.s32.totalorder %s1353_s19, 1 }
   0x8   : > { %p282_p3 = scmp.ne.s32.totalorder %s1671_s14, %s1667_s13  ;;  %s2065_s21 = smov (%p37_p0, %s35_s21), 0 }
   0x9   : > { %2056 = sst [smem:[#allocation6_spill]] %s2065_s21  ;;  %p1788_p4 = por %p277_p2, %p276_p1 }
   0xa   : > { %p283_p5 = scmp.eq.s32.totalorder %s1354_s20, 1  ;;  %s261_s24 = ssub.s32 %s1683_s17, %s2065_s21 }
   0xb   : > { %p1357_p6 = scmp.ge.s32.totalorder %s1687_s18, 1  ;;  %p264_p7 = scmp.eq.s32.totalorder %s261_s24, 0 }
   0xc   : > { %p1795_p8 = por %p283_p5, %p282_p3  ;;  %p344_p9 = scmp.lt.s32.totalorder %s1687_s18, 3 }
   0xd   : > { %s1801_s26 = scalar_select %p264_p7, %s1675_s15, %s266_s22  }
   0xe   : > { %p345_p10 = pnand %p1357_p6, %p344_p9 }
   0xf   : > { %p390_p11 = scmp.lt.s32.totalorder (!%p345_p10), %s1679_s16, 1  ;;  %vm436_vm0 = vcmask (!%p345_p10), 261120   ;;  %v1573_v0 = vld [vmem:[%s2044_s2 + $0x10] sm:$0xff] (!%p345_p10)   ;;  %v1577_v1 = vld [vmem:[%s2044_s2] sm:$0xff] (!%p345_p10)   ;;  %v1574_v14 = vld [vmem:[%s2044_s2 + $0x18] sm:$0xff] (!%p345_p10)   ;;  %vm647_vm1 = vcmask (!%p345_p10), 523264  }
  0x10   : > { %348 = sbr.rel (%p345_p10) target bundleno = 1551 (0x60f), region = 60  ;;  %1451 = vmatprep.mubr.msk.bf16.mxu1 (!%p345_p10), %vm436_vm0, %v1573_v0  ;;  %1443 = vmatprep.mubr.msk.bf16.mxu0 (!%p345_p10), %vm436_vm0, %v1577_v1  ;;  %v1575_v15 = vld [vmem:[%s2044_s2 + $0x20] sm:$0xff] (!%p345_p10)   ;;  %v1578_v16 = vld [vmem:[%s2044_s2 + $0x8] sm:$0xff] (!%p345_p10)   ;;  %s1402_s22 = sshll.u32 (!%p345_p10), %s1679_s16, 9 }
  0x11   : > { %v1576_v17 = vld [vmem:[%s2044_s2 + $0x28] sm:$0xff] (!%p345_p10)   ;;  %s1986_s28 = scalar_lea.hbm (!%p345_p10), %s2052_s10, %s1402_s22 }
  0x17   : > { %s391_s29 = scalar_select %p390_p11, %s1679_s16, 1 }
  0x19   : > { %s1400_s30 = sshll.u32 %s391_s29, 5 }
  0x1a   : > { %s397_s19 = scalar_lea.vmem %s2042_s0, %s1400_s30  ;;  %s402_s24 = scalar_lea.vmem %s2043_s1, %s1400_s30 }
  0x1b   : > { %v408_v2 = vld [vmem:[%s402_s24] sm:$0xff]  ;;  %v409_v3 = vld [vmem:[%s402_s24 + $0x8] sm:$0xff]  ;;  %v410_v4 = vld [vmem:[%s402_s24 + $0x10] sm:$0xff]  ;;  %s1690_s30 = smov [#allocation2]  }
  0x1c   : > { %v516_v5 = vpack.c.bf16 %v409_v3, %v408_v2  ;;  %v411_v6 = vld [vmem:[%s402_s24 + $0x18] sm:$0xff]  ;;  %v1818_v7 = vld [vmem:[%s397_s19] sm:$0xff]  ;;  %v1820_v8 = vld [vmem:[%s397_s19 + $0x8] sm:$0xff]  ;;  %s1613_s11 = sshll.u32 %s1690_s30, 4  ;;  %s1614_s11 = int_to_ptr.vmem [resolvable:$false] %s1613_s11 }
  0x1d   : > { %v517_v9 = vpack.c.bf16 %v411_v6, %v410_v4  ;;  %v1825_v10 = vpack.c.bf16 %v1820_v8, %v1818_v7  ;;  %v1827_v11 = vld [vmem:[%s397_s19 + $0x10] sm:$0xff]  ;;  %v1829_v12 = vld [vmem:[%s397_s19 + $0x18] sm:$0xff]  ;;  %s387_s19 = sand.u32 1, %s1671_s14   ;;  %s1615_s12 = scalar_lea.vmem %s1614_s11, 1024 }
  0x1e   : > { %1447 = vmatprep.subr.bf16.mxu1 %v516_v5  ;;  %v1833_v13 = vpack.c.bf16 %v1829_v12, %v1827_v11  ;;  %s1358_s20 = sshll.u32 %s387_s19, 5  ;;  %s1996_s16 = scalar_lea.sflag [#allocation3], %s387_s19 }
  0x1f   : > { %1448 = vmatpush3.bf16.msra.mxu1 %v516_v5  ;;  %1439 = vmatprep.subr.bf16.mxu0 %v1825_v10  ;;  %s389_s24 = scalar_lea.vmem [#allocation2], %s1358_s20 }
  0x20   : > { %1449 = vmatprep.subr.bf16.mxu1 %v517_v9  ;;  %1440 = vmatpush3.bf16.msra.mxu0 %v1825_v10  ;;  %s1263_s17 = sshll.u32 %s389_s24, 4  ;;  %s1988_s17 = int_to_ptr.vmem [resolvable:$true] %s1263_s17 }
  0x21   : > { %1441 = vmatprep.subr.bf16.mxu0 %v1833_v13  ;;  %s1609_s29 = scalar_lea.vmem %s1988_s17, 512  ;;  %p1616_p1 = scmp.lt.s32.totalorder %s1988_s17, %s1614_s11 }
  0x22   : > { %p1610_p12 = scmp.ne.s32.totalorder %s1988_s17, %s1609_s29  ;;  %p1617_p2 = scmp.lt.s32.totalorder %s1615_s12, %s1609_s29 }
  0x23   : > { %1450 = vmatpush3.bf16.msra.mxu1 %v517_v9 }
  0x24   : > { %1442 = vmatpush3.bf16.msra.mxu0 %v1833_v13  ;;  %p1611_p13 = pnand %p1610_p12, %p1788_p4  ;;  %p1618_p3 = por %p1617_p2, %p1616_p1 }
  0x26   : > { %1452 = vmatmul.mubr.msk.bf16.vlgmr.msra.gmra.mrb[0].mxu1 %vm436_vm0, %v1574_v14  ;;  %p1612_p0 = pneg %p1611_p13 }
  0x27   : > { %1455 = vmatprep.mubr.msk.bf16.mxu1 %vm436_vm0, %v1575_v15  ;;  %1444 = vmatmul.mubr.msk.bf16.vlgmr.msra.gmra.mrb[0].mxu0 %vm436_vm0, %v1578_v16 }
  0x28   : > { %p1619_p5 = pnand %p1618_p3, %p1612_p0 }
  0x2e   : > { %1456 = vmatmul.mubr.msk.bf16.gmra.mrb[4].mxu1 %vm436_vm0, %v1576_v17 }
  0xf9   : > { %v1453_v18 = vpop.f32.mrb[0].mxu1 }
  0xfa   : > { %v625_v19 = vmin.f32 %v1453_v18, 0.0  ;;  %v584_v20 = vpop.f32.mrb[1].mxu1  ;;  %v1855_v21 = vpop.f32.mrb[0].mxu0  ;;  %v621_v43 = vadd.f32 1.0, %v1453_v18  ;;  %vm617_vm2 = vcmp.gt.f32.partialorder %v1453_v18, 0.0 }
  0xfb   : > { %v623_v22 = vmin.f32 %v584_v20, 0.0  ;;  %v1454_v23 = vpop.f32.mrb[2].mxu1  ;;  %v1857_v24 = vpop.f32.mrb[1].mxu0  ;;  %v619_v46 = vadd.f32 1.0, %v584_v20  ;;  %vm615_vm3 = vcmp.gt.f32.partialorder %v584_v20, 0.0  ;;  %v502_v63 = vmin.f32 %v1855_v21, 0.0 }
  0xfc   : > { %v631_v25 = vmul.f32 1.442695, %v625_v19  ;;  %v626_v26 = vmin.f32 %v1454_v23, 0.0  ;;  %v587_v27 = vpop.f32.mrb[3].mxu1  ;;  %v1859_v30 = vpop.f32.mrb[2].mxu0  ;;  %v622_v48 = vadd.f32 1.0, %v1454_v23 }
  0xfd   : > { %v627_v28 = vmul.f32 1.442695, %v623_v22  ;;  %v624_v29 = vmin.f32 %v587_v27, 0.0  ;;  %v1861_v32 = vpop.f32.mrb[3].mxu0  ;;  %vm618_vm4 = vcmp.gt.f32.partialorder %v1454_v23, 0.0  ;;  %v620_v51 = vadd.f32 1.0, %v587_v27 }
  0xfe   : > { %1587 = vpow2.f32 %v631_v25  ;;  %v633_v31 = vmul.f32 1.442695, %v626_v26  ;;  %vm616_vm5 = vcmp.gt.f32.partialorder %v587_v27, 0.0  ;;  %v500_v0 = vmin.f32 %v1857_v24, 0.0 }
  0xff   : > { %1589 = vpow2.f32 %v627_v28  ;;  %v629_v33 = vmul.f32 1.442695, %v624_v29  ;;  %v503_v2 = vmin.f32 %v1859_v30, 0.0  ;;  %v501_v3 = vmin.f32 %v1861_v32, 0.0 }
 0x100   : > { %1591 = vpow2.f32 %v633_v31  ;;  %v508_v4 = vmul.f32 1.442695, %v502_v63  ;;  %v504_v5 = vmul.f32 1.442695, %v500_v0  ;;  %v498_v17 = vadd.f32 1.0, %v1855_v21 }
 0x101   : > { %1593 = vpow2.f32 %v629_v33  ;;  %v1457_v34 = vpop.f32.mrb[4].mxu1  ;;  %v510_v6 = vmul.f32 1.442695, %v503_v2  ;;  %v506_v9 = vmul.f32 1.442695, %v501_v3  ;;  %v496_v18 = vadd.f32 1.0, %v1857_v24 }
 0x102   : > { %v641_v35 = vmul.f32 0.015625, %v1457_v34  ;;  %v600_v36 = vpop.f32.mrb[5].mxu1  ;;  %1595 = vpow2.f32 %v508_v4  ;;  %v499_v19 = vadd.f32 1.0, %v1859_v30  ;;  %v497_v20 = vadd.f32 1.0, %v1861_v32  ;;  %v1579_v34 = vld [vmem:[%s2045_s3] sm:$0xff]  }
 0x103   : > { %v639_v37 = vmul.f32 0.015625, %v600_v36  ;;  %v1458_v38 = vpop.f32.mrb[6].mxu1  ;;  %1597 = vpow2.f32 %v504_v5  ;;  %vm494_vm6 = vcmp.gt.f32.partialorder %v1855_v21, 0.0  ;;  %vm492_vm7 = vcmp.gt.f32.partialorder %v1857_v24, 0.0 }
 0x104   : > { %v642_v39 = vmul.f32 0.015625, %v1458_v38  ;;  %v603_v40 = vpop.f32.mrb[7].mxu1  ;;  %1599 = vpow2.f32 %v510_v6  ;;  %vm495_vm8 = vcmp.gt.f32.partialorder %v1859_v30, 0.0  ;;  %vm493_vm9 = vcmp.gt.f32.partialorder %v1861_v32, 0.0  ;;  %v821_v38 = vld [vmem:[%s2049_s7 + $0x8] sm:$0xff] }
 0x105   : > { %v640_v41 = vmul.f32 0.015625, %v603_v40  ;;  %1601 = vpow2.f32 %v506_v9  ;;  %v1689_v36 = vmov 0   ;;  %v818_v40 = vld [vmem:[%s2048_s6 + $0x10] sm:$0xff] }
 0x106   : > { %v644_v42 = vpack.c.bf16 %v642_v39, %v641_v35  ;;  %v817_v35 = vld [vmem:[%s2048_s6 + $0x8] sm:$0xff]  ;;  %1572 = vset.pattern.permute.xlu1 %v1689_v36  ;;  %1571 = vset.pattern.permute.xlu0 %v1689_v36  ;;  %v827_v39 = vld [vmem:[%s2050_s8 + $0x18] sm:$0xff] }
 0x107   : > { %v643_v44 = vpack.c.bf16 %v640_v41, %v639_v37  ;;  %v825_v37 = vld [vmem:[%s2050_s8 + $0x8] sm:$0xff] }
 0x108   : > { %v1588_v45 = vpop.eup %1587  ;;  %v829_v41 = vld [vmem:[%s2051_s9 + $0x8] sm:$0xff] }
 0x109   : > { %v1590_v47 = vpop.eup %1589  ;;  %v637_v49 = vsel %vm617_vm2, %v621_v43, %v1588_v45  ;;  %1463 = vmatprep.mubr.msk.bf16.mxu0 %vm647_vm1, %v643_v44  ;;  %v831_v43 = vld [vmem:[%s2051_s9 + $0x18] sm:$0xff]  ;;  %v822_v44 = vld [vmem:[%s2049_s7 + $0x10] sm:$0xff] }
 0x10a   : > { %v1592_v50 = vpop.eup %1591  ;;  %v715_v52 = vsel %vm647_vm1, %v637_v49, 0.0  ;;  %v635_v53 = vsel %vm615_vm3, %v619_v46, %v1590_v47  ;;  %v823_v45 = vld [vmem:[%s2049_s7 + $0x18] sm:$0xff]  ;;  %v824_v46 = vld [vmem:[%s2050_s8] sm:$0xff]  ;;  %v826_v47 = vld [vmem:[%s2050_s8 + $0x10] sm:$0xff] }
 0x10b   : > { %v1594_v54 = vpop.eup %1593  ;;  %716 = vadd.xlane.f32.xlu1 %v715_v52  ;;  %v709_v55 = vsel %vm647_vm1, %v635_v53, 0.0  ;;  %v638_v56 = vsel %vm618_vm4, %v622_v48, %v1592_v50  ;;  %v828_v48 = vld [vmem:[%s2051_s9] sm:$0xff] }
 0x10c   : > { %710 = vadd.xlane.f32.xlu0 %v709_v55  ;;  %v636_v57 = vsel %vm616_vm5, %v620_v51, %v1594_v54  ;;  %v646_v58 = vpack.c.bf16 %v638_v56, %v637_v49  ;;  %v718_v60 = vsel %vm647_vm1, %v638_v56, 0.0  ;;  %v1596_v14 = vpop.eup %1595  ;;  %v830_v49 = vld [vmem:[%s2051_s9 + $0x10] sm:$0xff] }
 0x10d   : > { %v645_v59 = vpack.c.bf16 %v636_v57, %v635_v53  ;;  %v712_v61 = vsel %vm647_vm1, %v636_v57, 0.0  ;;  %v1598_v15 = vpop.eup %1597  ;;  %v1885_v23 = vsel %vm494_vm6, %v498_v17, %v1596_v14 }
 0x10e   : > { %v658_v1 = vsel %vm647_vm1, %v646_v58, 0  ;;  %v1600_v16 = vpop.eup %1599  ;;  %v512_v25 = vsel %vm492_vm7, %v496_v18, %v1598_v15 }
 0x10f   : > { %719 = vadd.xlane.f32.xlu1 %v718_v60  ;;  %1511 = vmatprep.subr.msk.bf16.mxu0 %vm647_vm1, %v645_v59  ;;  %v655_v62 = vsel %vm647_vm1, %v645_v59, 0  ;;  %v1602_v22 = vpop.eup %1601  ;;  %v1887_v26 = vsel %vm495_vm8, %v499_v19, %v1600_v16 }
 0x110   : > { %713 = vadd.xlane.f32.xlu0 %v712_v61  ;;  %1460 = vmatpush3.bf16.xpose.msra.mxu0 %v655_v62  ;;  %v513_v27 = vsel %vm493_vm9, %v497_v20, %v1602_v22  ;;  %v740_v28 = vpack.c.bf16 %v1887_v26, %v1885_v23 }
 0x111   : > { %1512 = vmatprep.subr.msk.bf16.mxu0 %vm647_vm1, %v646_v58  ;;  %v739_v29 = vpack.c.bf16 %v513_v27, %v512_v25 }
 0x113   : > { %1467 = vmatprep.subr.bf16.mxu1 %v739_v29 }
 0x114   : > { %1468 = vmatpush3.bf16.msra.mxu1 %v739_v29 }
 0x115   : > { %1469 = vmatprep.subr.bf16.mxu1 %v740_v28 }
 0x118   : > { %1462 = vmatpush3.bf16.xpose.msra.mxu0 %v658_v1  ;;  %1470 = vmatpush3.bf16.msra.mxu1 %v740_v28 }
 0x119   : > { %1483 = vmatprep.subr.bf16.mxu1 %v1825_v10 }
 0x11f   : > { %1464 = vmatmul.mubr.msk.bf16.vlgmr.msra.gmra.mrb[4].mxu0 %vm647_vm1, %v644_v42  ;;  %v819_v42 = vld [vmem:[%s2048_s6 + $0x18] sm:$0xff] }
 0x120   : > { %1479 = vmatprep.mubr.msk.bf16.mxu0 %vm436_vm0, %v1579_v34  ;;  %941 = vperm.xlu1 %1572, %v817_v35  }
 0x198   : > { %v717_v53 = vpop.xlane.xlu1 %716 }
 0x199   : > { %v711_v50 = vpop.xlane.xlu0 %710  ;;  %v723_v56 = vmul.f32 %v717_v53, %v1885_v23  ;;  %v1580_v23 = vld [vmem:[%s2045_s3 + $0x8] sm:$0xff]  }
 0x19a   : > { %v721_v54 = vmul.f32 %v711_v50, %v512_v25  ;;  %v1581_v25 = vld [vmem:[%s2046_s4] sm:$0xff]  }
 0x19c   : > { %v720_v57 = vpop.xlane.xlu1 %719 }
 0x19d   : > { %v714_v51 = vpop.xlane.xlu0 %713  ;;  %v724_v59 = vmul.f32 %v720_v57, %v1887_v26 }
 0x19e   : > { %v722_v52 = vmul.f32 %v714_v51, %v513_v27 }
 0x1a0   : > { %v725_v55 = vadd.f32 %v722_v52, %v721_v54 }
 0x1a2   : > { %v726_v58 = vadd.f32 %v725_v55, %v723_v56 }
 0x1a4   : > { %v727_v60 = vadd.f32 %v726_v58, %v724_v59 }
 0x1a6   : > { %v728_v61 = vrot.slane %v727_v60, 4 }
 0x1a8   : > { %v729_v62 = vadd.f32 %v728_v61, %v727_v60 }
 0x1aa   : > { %v730_v63 = vrot.slane %v729_v62, 2 }
 0x1ac   : > { %v731_v0 = vadd.f32 %v730_v63, %v729_v62 }
 0x1ae   : > { %v732_v1 = vrot.slane %v731_v0, 1 }
 0x1b0   : > { %v733_v2 = vadd.f32 %v732_v1, %v731_v0 }
 0x1b2   : > { %v734_v3 = vadd.f32 1e-06, %v733_v2 }
 0x1b4   : > { %1603 = vrcp.f32 %v734_v3 }
 0x1be   : > { %v1604_v4 = vpop.eup %1603 }
 0x1bf   : > { %v736_v6 = vmul.f32 64.0, %v1604_v4 }
 0x1f2   : > { %v1465_v21 = vpop.f32.mrb[4].mxu0 }
 0x1f3   : > { %v694_v24 = vpop.f32.mrb[5].mxu0 }
 0x1f4   : > { %v1466_v30 = vpop.f32.mrb[6].mxu0 }
 0x1f5   : > { %v738_v31 = vpack.c.bf16 %v1466_v30, %v1465_v21  ;;  %v697_v32 = vpop.f32.mrb[7].mxu0 }
 0x1f6   : > { %v737_v33 = vpack.c.bf16 %v697_v32, %v694_v24 }
 0x1f8   : > { %1471 = vmatprep.mubr.msk.bf16.mxu1 %vm436_vm0, %v737_v33 }
 0x1f9   : > { %1472 = vmatmul.mubr.msk.bf16.vlgmr.msra.gmra.mrb[8].mxu1 %vm436_vm0, %v738_v31 }
 0x1fa   : > { %1484 = vmatpush3.bf16.msra.mxu1 %v1825_v10  ;;  %v820_v10 = vld [vmem:[%s2049_s7] sm:$0xff]  ;;  %1491 = vmatprep.mubr.msk.bf16.mxu1 %vm647_vm1, %v1581_v25 }
 0x1fb   : > { %1485 = vmatprep.subr.bf16.mxu1 %v1833_v13  ;;  %960 = vperm.xlu1 %1572, %v820_v10   ;;  %v1585_v25 = vld [vmem:[%s2047_s5] sm:$0xff]  }
 0x1fe   : > { %1486 = vmatpush3.bf16.msra.mxu1 %v1833_v13  ;;  %v816_v13 = vld [vmem:[%s2048_s6] sm:$0xff] }
 0x1ff   : > { %936 = vperm.xlu0 %1571, %v816_v13   ;;  %965 = vperm.xlu1 %1572, %v821_v38  }
 0x203   : > { %1199 = vperm.xlu0 %1571, %v825_v37   ;;  %946 = vperm.xlu1 %1572, %v818_v40  }
 0x207   : > { %1209 = vperm.xlu0 %1571, %v827_v39   ;;  %951 = vperm.xlu1 %1572, %v819_v42  }
 0x20b   : > { %1223 = vperm.xlu0 %1571, %v829_v41   ;;  %970 = vperm.xlu1 %1572, %v822_v44   ;;  %v942_v44 = vpop.permute.xlu1 %941 }
 0x20f   : > { %1233 = vperm.xlu0 %1571, %v831_v43   ;;  %975 = vperm.xlu1 %1572, %v823_v45  }
 0x213   : > { %1194 = vperm.xlu1 %1572, %v824_v46  }
 0x217   : > { %1204 = vperm.xlu1 %1572, %v826_v47  }
 0x21b   : > { %1218 = vperm.xlu1 %1572, %v828_v48  }
 0x21f   : > { %1228 = vperm.xlu1 %1572, %v830_v49  }
 0x27a   : > { %v961_v49 = vpop.permute.xlu1 %960 }
 0x27e   : > { %v966_v53 = vpop.permute.xlu1 %965  ;;  %v937_v2 = vpop.permute.xlu0 %936 }
 0x282   : > { %v947_v57 = vpop.permute.xlu1 %946 }
 0x286   : > { %v952_v59 = vpop.permute.xlu1 %951 }
 0x28a   : > { %v971_v60 = vpop.permute.xlu1 %970 }
 0x2cc   : > { %v1473_v5 = vpop.f32.mrb[8].mxu1 }
 0x2cd   : > { %v781_v9 = vpop.f32.mrb[9].mxu1  ;;  %v798_v15 = vmul.f32 %v1473_v5, %v736_v6 }
 0x2ce   : > { %v1474_v14 = vpop.f32.mrb[10].mxu1  ;;  %v796_v18 = vmul.f32 %v781_v9, %v736_v6  ;;  %v976_v9 = vpop.permute.xlu1 %975 }
 0x2cf   : > { %v799_v16 = vmul.f32 %v1474_v14, %v736_v6  ;;  %v784_v17 = vpop.f32.mrb[11].mxu1 }
 0x2d0   : > { %v797_v19 = vmul.f32 %v784_v17, %v736_v6 }
 0x2d1   : > { %v833_v20 = vpack.c.bf16 %v799_v16, %v798_v15 }
 0x2d2   : > { %v832_v22 = vpack.c.bf16 %v797_v19, %v796_v18 }
 0x2d4   : > { %1475 = vmatprep.subr.bf16.mxu0 %v832_v22 }
 0x2d5   : > { %1476 = vmatpush3.bf16.msra.mxu0 %v832_v22  ;;  %v1583_v22 = vld [vmem:[%s2046_s4 + $0x10] sm:$0xff]  }
 0x2d6   : > { %1477 = vmatprep.subr.bf16.mxu0 %v833_v20 }
 0x2d9   : > { %1478 = vmatpush3.bf16.msra.mxu0 %v833_v20  ;;  %v1582_v20 = vld [vmem:[%s2046_s4 + $0x8] sm:$0xff]  }
 0x2dc   : > { %1480 = vmatmul.mubr.msk.bf16.vlgmr.msra.gmra.mrb[8].mxu0 %vm436_vm0, %v1580_v23  ;;  %v1584_v23 = vld [vmem:[%s2046_s4 + $0x18] sm:$0xff]  }
 0x2dd   : > { %1507 = vmatprep.mubr.msk.bf16.mxu0 %vm647_vm1, %v1585_v25 }
 0x3af   : > { %v1481_v26 = vpop.f32.mrb[8].mxu0 }
 0x3b0   : > { %v884_v27 = vpop.f32.mrb[9].mxu0 }
 0x3b1   : > { %v1482_v28 = vpop.f32.mrb[10].mxu0 }
 0x3b2   : > { %v887_v29 = vpop.f32.mrb[11].mxu0 }
 0x3b3   : > { %v899_v21 = vadd.f32 %v887_v29, %v884_v27 }
 0x3b5   : > { %v900_v24 = vadd.f32 %v1481_v26, %v899_v21 }
 0x3b7   : > { %v901_v30 = vadd.f32 %v1482_v28, %v900_v24 }
 0x3b9   : > { %v902_v31 = vrot.slane %v901_v30, 4 }
 0x3bb   : > { %v903_v32 = vadd.f32 %v902_v31, %v901_v30 }
 0x3bd   : > { %v904_v33 = vrot.slane %v903_v32, 2 }
 0x3bf   : > { %v905_v34 = vadd.f32 %v904_v33, %v903_v32 }
 0x3c1   : > { %v906_v35 = vrot.slane %v905_v34, 1 }
 0x3c3   : > { %v907_v36 = vadd.f32 %v906_v35, %v905_v34 }
 0x3c5   : > { %v909_v10 = vmul.f32 0.03125, %v907_v36 }
 0x3c7   : > { %v910_v13 = vsub.f32 %v884_v27, %v909_v10  ;;  %v911_v37 = vsub.f32 %v887_v29, %v909_v10  ;;  %v912_v38 = vsub.f32 %v1481_v26, %v909_v10  ;;  %v913_v39 = vsub.f32 %v1482_v28, %v909_v10 }
 0x3c9   : > { %v914_v40 = vmul.f32 %v910_v13, %v910_v13  ;;  %v915_v41 = vmul.f32 %v911_v37, %v911_v37  ;;  %v916_v42 = vmul.f32 %v912_v38, %v912_v38  ;;  %v917_v45 = vmul.f32 %v913_v39, %v913_v39 }
 0x3cb   : > { %v918_v43 = vadd.f32 %v915_v41, %v914_v40 }
 0x3cd   : > { %v919_v46 = vadd.f32 %v918_v43, %v916_v42  ;;  %v1586_v42 = vld [vmem:[%s2047_s5 + $0x8] sm:$0xff]  }
 0x3cf   : > { %v920_v47 = vadd.f32 %v919_v46, %v917_v45 }
 0x3d1   : > { %v921_v48 = vrot.slane %v920_v47, 4 }
 0x3d3   : > { %v922_v50 = vadd.f32 %v921_v48, %v920_v47 }
 0x3d5   : > { %v923_v51 = vrot.slane %v922_v50, 2 }
 0x3d7   : > { %v924_v52 = vadd.f32 %v923_v51, %v922_v50 }
 0x3d9   : > { %v925_v54 = vrot.slane %v924_v52, 1 }
 0x3db   : > { %v926_v55 = vadd.f32 %v925_v54, %v924_v52 }
 0x3dd   : > { %v927_v56 = vmul.f32 0.03125, %v926_v55 }
 0x3df   : > { %v928_v58 = vadd.f32 1e-05, %v927_v56 }
 0x3e1   : > { %1605 = vrsqrt.f32 %v928_v58 }
 0x3eb   : > { %v1606_v61 = vpop.eup %1605 }
 0x3ec   : > { %v931_v62 = vmul.f32 %v1606_v61, %v911_v37  ;;  %v932_v63 = vmul.f32 %v1606_v61, %v912_v38  ;;  %v933_v0 = vmul.f32 %v1606_v61, %v913_v39  ;;  %v930_v1 = vmul.f32 %v1606_v61, %v910_v13 }
 0x3ee   : > { %v955_v3 = vmul.f32 %v942_v44, %v931_v62  ;;  %v956_v4 = vmul.f32 %v947_v57, %v932_v63  ;;  %v957_v5 = vmul.f32 %v952_v59, %v933_v0  ;;  %v954_v6 = vmul.f32 %v937_v2, %v930_v1 }
 0x3f0   : > { %v979_v14 = vadd.f32 %v966_v53, %v955_v3  ;;  %v980_v15 = vadd.f32 %v971_v60, %v956_v4  ;;  %v981_v16 = vadd.f32 %v976_v9, %v957_v5  ;;  %v978_v17 = vadd.f32 %v961_v49, %v954_v6 }
 0x3f2   : > { %v983_v18 = vpack.c.bf16 %v981_v16, %v980_v15  ;;  %v982_v19 = vpack.c.bf16 %v979_v14, %v978_v17  ;;  %v1195_v16 = vpop.permute.xlu1 %1194  ;;  %v1200_v17 = vpop.permute.xlu0 %1199 }
 0x3f4   : > { %1487 = vmatprep.subr.bf16.mxu1 %v982_v19 }
 0x3f5   : > { %1488 = vmatpush3.bf16.msra.mxu1 %v982_v19 }
 0x3f6   : > { %1489 = vmatprep.subr.bf16.mxu1 %v983_v18 }
 0x3f9   : > { %1490 = vmatpush3.bf16.msra.mxu1 %v983_v18 }
 0x3fc   : > { %1492 = vmatmul.mubr.msk.bf16.vlgmr.msra.gmra.mrb[12].mxu1 %vm647_vm1, %v1582_v20  ;;  %v1205_v20 = vpop.permute.xlu1 %1204 }
 0x3fd   : > { %1495 = vmatprep.mubr.msk.bf16.mxu1 %vm647_vm1, %v1583_v22  ;;  %v1210_v22 = vpop.permute.xlu0 %1209 }
 0x401   : > { %v1224_v25 = vpop.permute.xlu0 %1223 }
 0x404   : > { %1496 = vmatmul.mubr.msk.bf16.gmra.mrb[16].mxu1 %vm647_vm1, %v1584_v23  ;;  %v1219_v23 = vpop.permute.xlu1 %1218 }
 0x4cf   : > { %v1493_v26 = vpop.f32.mrb[12].mxu1 }
 0x4d0   : > { %v1050_v27 = vpop.f32.mrb[13].mxu1  ;;  %v1083_v29 = vmax.f32 %v1493_v26, 0.0 }
 0x4d1   : > { %v1494_v28 = vpop.f32.mrb[14].mxu1  ;;  %v1081_v30 = vmax.f32 %v1050_v27, 0.0 }
 0x4d2   : > { %v1084_v21 = vmax.f32 %v1494_v28, 0.0  ;;  %v1053_v24 = vpop.f32.mrb[15].mxu1 }
 0x4d3   : > { %v1082_v31 = vmax.f32 %v1053_v24, 0.0 }
 0x4d4   : > { %v1090_v32 = vpack.c.bf16 %v1084_v21, %v1083_v29 }
 0x4d5   : > { %v1089_v33 = vpack.c.bf16 %v1082_v31, %v1081_v30 }
 0x4d7   : > { %v1497_v34 = vpop.f32.mrb[16].mxu1  ;;  %1499 = vmatprep.subr.bf16.mxu0 %v1089_v33 }
 0x4d8   : > { %v1066_v35 = vpop.f32.mrb[17].mxu1  ;;  %1500 = vmatpush3.bf16.msra.mxu0 %v1089_v33  ;;  %v1087_v10 = vmax.f32 %v1497_v34, 0.0  ;;  %v1229_v33 = vpop.permute.xlu1 %1228 }
 0x4d9   : > { %v1498_v36 = vpop.f32.mrb[18].mxu1  ;;  %1501 = vmatprep.subr.bf16.mxu0 %v1090_v32  ;;  %v1085_v38 = vmax.f32 %v1066_v35, 0.0  ;;  %v1234_v34 = vpop.permute.xlu0 %1233 }
 0x4da   : > { %v1088_v13 = vmax.f32 %v1498_v36, 0.0  ;;  %v1069_v37 = vpop.f32.mrb[19].mxu1 }
 0x4db   : > { %v1086_v39 = vmax.f32 %v1069_v37, 0.0 }
 0x4dc   : > { %v1092_v40 = vpack.c.bf16 %v1088_v13, %v1087_v10  ;;  %1502 = vmatpush3.bf16.msra.mxu0 %v1090_v32 }
 0x4dd   : > { %v1091_v41 = vpack.c.bf16 %v1086_v39, %v1085_v38 }
 0x4df   : > { %1503 = vmatprep.subr.bf16.mxu0 %v1091_v41 }
 0x4e0   : > { %1504 = vmatpush3.bf16.msra.mxu0 %v1091_v41 }
 0x4e1   : > { %1505 = vmatprep.subr.bf16.mxu0 %v1092_v40 }
 0x4e4   : > { %1506 = vmatpush3.bf16.msra.mxu0 %v1092_v40 }
 0x4e7   : > { %1508 = vmatmul.mubr.msk.bf16.vlgmr.msra.gmra.mrb[12].mxu0 %vm647_vm1, %v1586_v42 }
 0x5ba   : > { %v1509_v43 = vpop.f32.mrb[12].mxu0 }
 0x5bb   : > { %v1143_v44 = vpop.f32.mrb[13].mxu0 }
 0x5bc   : > { %v1510_v45 = vpop.f32.mrb[14].mxu0 }
 0x5bd   : > { %v1146_v46 = vpop.f32.mrb[15].mxu0 }
 0x5be   : > { %v1158_v47 = vadd.f32 %v1146_v46, %v1143_v44 }
 0x5c0   : > { %v1159_v48 = vadd.f32 %v1509_v43, %v1158_v47 }
 0x5c2   : > { %v1160_v49 = vadd.f32 %v1510_v45, %v1159_v48 }
 0x5c4   : > { %v1161_v50 = vrot.slane %v1160_v49, 4 }
 0x5c6   : > { %v1162_v51 = vadd.f32 %v1161_v50, %v1160_v49 }
 0x5c8   : > { %v1163_v52 = vrot.slane %v1162_v51, 2 }
 0x5ca   : > { %v1164_v53 = vadd.f32 %v1163_v52, %v1162_v51 }
 0x5cc   : > { %v1165_v54 = vrot.slane %v1164_v53, 1 }
 0x5ce   : > { %v1166_v55 = vadd.f32 %v1165_v54, %v1164_v53 }
 0x5d0   : > { %v1167_v56 = vmul.f32 0.03125, %v1166_v55 }
 0x5d2   : > { %v1168_v57 = vsub.f32 %v1143_v44, %v1167_v56  ;;  %v1169_v58 = vsub.f32 %v1146_v46, %v1167_v56  ;;  %v1170_v59 = vsub.f32 %v1509_v43, %v1167_v56  ;;  %v1171_v60 = vsub.f32 %v1510_v45, %v1167_v56 }
 0x5d4   : > { %v1172_v61 = vmul.f32 %v1168_v57, %v1168_v57  ;;  %v1173_v62 = vmul.f32 %v1169_v58, %v1169_v58  ;;  %v1174_v63 = vmul.f32 %v1170_v59, %v1170_v59  ;;  %v1175_v1 = vmul.f32 %v1171_v60, %v1171_v60 }
 0x5d6   : > { %v1176_v0 = vadd.f32 %v1173_v62, %v1172_v61 }
 0x5d8   : > { %v1177_v2 = vadd.f32 %v1176_v0, %v1174_v63 }
 0x5da   : > { %v1178_v3 = vadd.f32 %v1177_v2, %v1175_v1 }
 0x5dc   : > { %v1179_v4 = vrot.slane %v1178_v3, 4 }
 0x5de   : > { %v1180_v5 = vadd.f32 %v1179_v4, %v1178_v3 }
 0x5e0   : > { %v1181_v6 = vrot.slane %v1180_v5, 2 }
 0x5e2   : > { %v1182_v9 = vadd.f32 %v1181_v6, %v1180_v5 }
 0x5e4   : > { %v1183_v14 = vrot.slane %v1182_v9, 1 }
 0x5e6   : > { %v1184_v15 = vadd.f32 %v1183_v14, %v1182_v9 }
 0x5e8   : > { %v1185_v18 = vmul.f32 0.03125, %v1184_v15 }
 0x5ea   : > { %v1186_v19 = vadd.f32 1e-05, %v1185_v18 }
 0x5ec   : > { %1607 = vrsqrt.f32 %v1186_v19 }
 0x5f6   : > { %v1608_v26 = vpop.eup %1607 }
 0x5f7   : > { %v1188_v27 = vmul.f32 %v1608_v26, %v1168_v57  ;;  %v1189_v28 = vmul.f32 %v1608_v26, %v1169_v58  ;;  %v1190_v29 = vmul.f32 %v1608_v26, %v1170_v59  ;;  %v1191_v21 = vmul.f32 %v1608_v26, %v1171_v60 }
 0x5f9   : > { %v1212_v24 = vmul.f32 %v1195_v16, %v1188_v27  ;;  %v1213_v30 = vmul.f32 %v1200_v17, %v1189_v28  ;;  %v1214_v31 = vmul.f32 %v1205_v20, %v1190_v29  ;;  %v1215_v32 = vmul.f32 %v1210_v22, %v1191_v21 }
 0x5fb   : > { %v1236_v35 = vadd.f32 %v1219_v23, %v1212_v24  ;;  %v1237_v36 = vadd.f32 %v1224_v25, %v1213_v30  ;;  %v1238_v10 = vadd.f32 %v1229_v33, %v1214_v31  ;;  %v1239_v13 = vadd.f32 %v1234_v34, %v1215_v32 }
 0x5fd   : > { %v1240_v37 = vadd.f32 %v1236_v35, %v1818_v7  ;;  %v1241_v38 = vadd.f32 %v1237_v36, %v1820_v8  ;;  %v1242_v39 = vadd.f32 %v1238_v10, %v1827_v11  ;;  %v1243_v40 = vadd.f32 %v1239_v13, %v1829_v12 }
 0x5ff   : > { %1244 = vst [vmem:[%s389_s24] sm:$0xff] %v1240_v37  ;;  %1245 = vst [vmem:[%s389_s24 + $0x8] sm:$0xff] %v1241_v38 }
 0x600   : > { %1246 = vst [vmem:[%s389_s24 + $0x10] sm:$0xff] %v1242_v39  ;;  %1247 = vst [vmem:[%s389_s24 + $0x18] sm:$0xff] %v1243_v40 }
 0x601   : > { %1622 = shalt.err (!%p1619_p5)
}
 0x602   : > { %s1623_s19 = scalar_lea.hbm %s1986_s28, 512  ;;  %s1627_s24 = scalar_lea.hbm %s2052_s10, 1024 }
 0x603   : > { %p1624_p6 = scmp.ne.s32.totalorder %s1986_s28, %s1623_s19  ;;  %p1628_p10 = scmp.lt.u32.totalorder %s1986_s28, %s2052_s10 }
 0x604   : > { %p1629_p11 = scmp.lt.u32.totalorder %s1627_s24, %s1623_s19  ;;  %p1631_p13 = scmp.lt.u32.totalorder %s1623_s19, %s1986_s28 }
 0x605   : > { %p1625_p7 = pnand %p1624_p6, %p1788_p4 }
 0x606   : > { %p1630_p12 = por %p1629_p11, %p1628_p10 }
 0x607   : > { %p1626_p9 = pneg %p1625_p7 }
 0x608   : > { %p1632_p0 = por %p1631_p13, %p1630_p12 }
 0x60a   : > { %p1633_p1 = pnand %p1632_p0, %p1626_p9 }
 0x60c   : > { %1636 = shalt.err (!%p1633_p1)
}
 0x60d   : > { %s1691_s29 = smov 128   ;;  %s1692_s30 = smov 8  }
 0x60e   : > { %1513 = dma.vmem_to_hbm [thread:$0]  (%p1788_p4), %s1988_s17, 512, %s1986_s28, %s1996_s16, %s1691_s29, %s1691_s29, %s1692_s30  }
 0x60f PF: > { %p1519_p2 = scmp.ge.s32.totalorder %s1687_s18, 2  ;;  %s1278_s11 = sand.u32 1, %s1667_s13  }
 0x610   : > { %s1279_s12 = scalar_lea.sflag [#allocation3], %s1278_s11 }
 0x611   : > { %p1516_p3 = pnand %p1519_p2, %p1795_p8 }
 0x613   : > { %1662 = dma.done.wait (!%p1516_p3), %s1279_s12, 512  }
 0x614   : > { %1664 = vsyncadd (!%p1516_p3), %s1279_s12, 4294966784  ;;  %s23_s18 = sadd.s32 1, %s1687_s18   ;;  %s2059_s16 = sld [smem:[#allocation5_spill]] }
 0x615   : > { %p20_p5 = scmp.ge.s32.totalorder %s23_s18, 4   ;;  %s2060_s17 = sld [smem:[#allocation6_spill]] }
 0x616   : > { %s2061_s13 = smov %s1671_s14  ;;  %s2062_s14 = smov %s1675_s15 }
 0x617   : > { %s2063_s15 = smov %s1801_s26  ;;  %22 = sbr.rel (!%p20_p5) target bundleno = 4 (0x4), region = 98 }
 0x61e   :  { %1284 = vsyncpa [#allocation3], 1 }
 0x61f   :  { %1286 = vsyncpa [#allocation3 + $0x1], 1 }

</bundles_post_ra>
